<compile_context>
chip_gen: v5e
topology: v5e:2x2
jax: 0.10.0
libtpu: 0.0.40
codegen_flags: <defaults>
</compile_context>

<pallas_src>
import jax
import jax.numpy as jnp
from jax.experimental import pallas as pl
from jax.experimental.pallas import tpu as pltpu


# ----------------------------------------------------------------------------
# Fused Pallas kernel: encoder over all 4B rows + latent diffs, all in VMEM.
# ----------------------------------------------------------------------------

def _enc_priors_kernel(obs_ref, w1_ref, b1_ref, w2_ref, b2_ref, w3_ref, b3_ref,
                       z_ref, zd_ref):
    # obs_ref: (4B, O), rows stacked as [o1 ; o2 ; o1_next ; o2_next].
    obs = obs_ref[...]

    # MXU matmuls: explicit bf16 operands (single-pass on every generation),
    # f32 accumulation.  Bias-add / ReLU stay in f32 (v5e VPU has no bf16).
    h = jnp.dot(obs.astype(jnp.bfloat16), w1_ref[...].astype(jnp.bfloat16),
                preferred_element_type=jnp.float32)
    h = jnp.maximum(h + b1_ref[...], 0.0)
    h = jnp.dot(h.astype(jnp.bfloat16), w2_ref[...].astype(jnp.bfloat16),
                preferred_element_type=jnp.float32)
    h = jnp.maximum(h + b2_ref[...], 0.0)
    z = jnp.dot(h.astype(jnp.bfloat16), w3_ref[...].astype(jnp.bfloat16),
                preferred_element_type=jnp.float32) + b3_ref[...]

    # Dense output slabs.
    #   z_ref  : (4B, z) = [z1 ; z2 ; z1_next ; z2_next]
    #   zd_ref : (2B, z) = [z1_next - z1 ; z2_next - z2]
    # The diff is one full-width subtract of the top half against the bottom
    # half -- no per-stream masked partial stores.
    half = z.shape[0] // 2
    z_ref[...] = z
    zd_ref[...] = z[half:, :] - z[:half, :]


def _vspec():
    return pl.BlockSpec(memory_space=pltpu.MemorySpace.VMEM)


# ----------------------------------------------------------------------------
# EncPriors.forward — single fused pallas_call; per-stream split in the wrapper.
# ----------------------------------------------------------------------------

def enc_priors_forward(params, o1, o1_next, o2, o2_next):
    B, o_dim = o1.shape
    h_dim = params["w1"].shape[1]
    z_dim = params["w3"].shape[1]
    rows = 4 * B

    # Pre-stack the four observation batches into ONE dense (4B, O) input:
    # a single input DMA and no in-kernel relayout.  Order [o1; o2; o1n; o2n]
    # makes the diff slab a top-half-minus-bottom-half subtract.
    obs = jnp.concatenate([o1, o2, o1_next, o2_next], axis=0)

    flops = 2 * rows * (o_dim * h_dim + h_dim * h_dim + h_dim * z_dim)
    bytes_accessed = 4 * (rows * o_dim
                          + o_dim * h_dim + h_dim
                          + h_dim * h_dim + h_dim
                          + h_dim * z_dim + z_dim
                          + rows * z_dim + (rows // 2) * z_dim)

    z_all, zd_all = pl.pallas_call(
        _enc_priors_kernel,
        out_shape=(jax.ShapeDtypeStruct((rows, z_dim), jnp.float32),
                   jax.ShapeDtypeStruct((2 * B, z_dim), jnp.float32)),
        in_specs=[_vspec()] * 7,
        out_specs=(_vspec(), _vspec()),
        cost_estimate=pl.CostEstimate(flops=flops, transcendentals=0,
                                      bytes_accessed=bytes_accessed),
    )(obs,
      params["w1"], params["b1"],
      params["w2"], params["b2"],
      params["w3"], params["b3"])

    z1 = z_all[0 * B:1 * B]
    z2 = z_all[1 * B:2 * B]
    z1n = z_all[2 * B:3 * B]
    z2n = z_all[3 * B:4 * B]
    z1d = zd_all[0:B]
    z2d = zd_all[B:2 * B]
    return z1, z1n, z1d, z2, z2n, z2d


# ----------------------------------------------------------------------------
# Pure-JAX reference (for self-check) and PyTorch-Linear-style init.
# ----------------------------------------------------------------------------

def _encoder_ref(params, o):
    h = jnp.maximum(o @ params["w1"] + params["b1"], 0.0)
    h = jnp.maximum(h @ params["w2"] + params["b2"], 0.0)
    return h @ params["w3"] + params["b3"]


def enc_priors_forward_ref(params, o1, o1_next, o2, o2_next):
    z1 = _encoder_ref(params, o1)
    z1n = _encoder_ref(params, o1_next)
    z2 = _encoder_ref(params, o2)
    z2n = _encoder_ref(params, o2_next)
    return z1, z1n, z1n - z1, z2, z2n, z2n - z2


def _linear_params(key, fan_in, fan_out):
    kw, kb = jax.random.split(key)
    bound = 1.0 / jnp.sqrt(float(fan_in))
    w = jax.random.uniform(kw, (fan_in, fan_out), jnp.float32, -bound, bound)
    b = jax.random.uniform(kb, (1, fan_out), jnp.float32, -bound, bound)
    return w, b


def init_params(key, o_dim, z_dim, h_dim):
    k1, k2, k3 = jax.random.split(key, 3)
    w1, b1 = _linear_params(k1, o_dim, h_dim)
    w2, b2 = _linear_params(k2, h_dim, h_dim)
    w3, b3 = _linear_params(k3, h_dim, z_dim)
    return {"w1": w1, "b1": b1, "w2": w2, "b2": b2, "w3": w3, "b3": b3}


if __name__ == "__main__":
    # Module defaults: z_dim=20, h_dim=256 (h_dim kept lane-dense).
    B, O_DIM, Z_DIM, H_DIM = 2, 16, 20, 256

    key = jax.random.PRNGKey(0)
    k_par, k_o1, k_o1n, k_o2, k_o2n = jax.random.split(key, 5)

    params = init_params(k_par, O_DIM, Z_DIM, H_DIM)

    o1 = jax.random.normal(k_o1, (B, O_DIM), jnp.float32)
    o1_next = jax.random.normal(k_o1n, (B, O_DIM), jnp.float32)
    o2 = jax.random.normal(k_o2, (B, O_DIM), jnp.float32)
    o2_next = jax.random.normal(k_o2n, (B, O_DIM), jnp.float32)

    fwd = jax.jit(enc_priors_forward)
    outs = fwd(params, o1, o1_next, o2, o2_next)
    outs = jax.block_until_ready(outs)

    z1, z1_next, z1d, z2, z2_next, z2d = outs
    assert all(x.shape == (B, Z_DIM) for x in outs)
    assert all(bool(jnp.all(jnp.isfinite(x))) for x in outs)

    # Numerical self-check against a plain-JAX f32 reference (bf16-class
    # matmul tolerance: kernel issues single-pass bf16 MXU matmuls).
    refs = enc_priors_forward_ref(params, o1, o1_next, o2, o2_next)
    for got, want in zip(outs, refs):
        assert bool(jnp.allclose(got, want, rtol=2e-2, atol=2e-2))

    print("KERNEL_OK")
</pallas_src>

<mosaic_0001>
module attributes {stable_mosaic.version = 11 : i64} {
  func.func @_enc_priors_kernel(%arg0: memref<8x16xf32, #tpu.memory_space<vmem>>, %arg1: memref<16x256xf32, #tpu.memory_space<vmem>>, %arg2: memref<1x256xf32, #tpu.memory_space<vmem>>, %arg3: memref<256x256xf32, #tpu.memory_space<vmem>>, %arg4: memref<1x256xf32, #tpu.memory_space<vmem>>, %arg5: memref<256x20xf32, #tpu.memory_space<vmem>>, %arg6: memref<1x20xf32, #tpu.memory_space<vmem>>, %arg7: memref<8x20xf32, #tpu.memory_space<vmem>>, %arg8: memref<4x20xf32, #tpu.memory_space<vmem>>) attributes {dimension_semantics = [], scalar_prefetch = 0 : i64, scratch_operands = 0 : i64, tpu.core_type = #tpu.core_type<tc>} {
    %c0 = arith.constant 0 : index
    %c0_0 = arith.constant 0 : index
    %0 = vector.load %arg0[%c0, %c0_0] : memref<8x16xf32, #tpu.memory_space<vmem>>, vector<8x16xf32>
    %1 = arith.truncf %0 : vector<8x16xf32> to vector<8x16xbf16>
    %c0_1 = arith.constant 0 : index
    %c0_2 = arith.constant 0 : index
    %2 = vector.load %arg1[%c0_1, %c0_2] : memref<16x256xf32, #tpu.memory_space<vmem>>, vector<16x256xf32>
    %3 = arith.truncf %2 : vector<16x256xf32> to vector<16x256xbf16>
    %cst = arith.constant dense<0.000000e+00> : vector<8x256xf32>
    %4 = tpu.matmul %1, %3, %cst {dimension_numbers = #tpu.dot_dimension_numbers<[1], [0], [0], [1], [0, 0, 1, 1], [], []>} : vector<8x16xbf16>, vector<16x256xbf16>, vector<8x256xf32> -> vector<8x256xf32>
    %c0_3 = arith.constant 0 : index
    %c0_4 = arith.constant 0 : index
    %5 = vector.load %arg2[%c0_3, %c0_4] : memref<1x256xf32, #tpu.memory_space<vmem>>, vector<1x256xf32>
    %6 = vector.broadcast %5 : vector<1x256xf32> to vector<8x256xf32>
    %7 = arith.addf %4, %6 : vector<8x256xf32>
    %cst_5 = arith.constant 0.000000e+00 : f32
    %8 = vector.broadcast %cst_5 : f32 to vector<8x256xf32>
    %9 = arith.maximumf %7, %8 : vector<8x256xf32>
    %10 = arith.truncf %9 : vector<8x256xf32> to vector<8x256xbf16>
    %c0_6 = arith.constant 0 : index
    %c0_7 = arith.constant 0 : index
    %11 = vector.load %arg3[%c0_6, %c0_7] : memref<256x256xf32, #tpu.memory_space<vmem>>, vector<256x256xf32>
    %12 = arith.truncf %11 : vector<256x256xf32> to vector<256x256xbf16>
    %cst_8 = arith.constant dense<0.000000e+00> : vector<8x256xf32>
    %13 = tpu.matmul %10, %12, %cst_8 {dimension_numbers = #tpu.dot_dimension_numbers<[1], [0], [0], [1], [0, 0, 1, 1], [], []>} : vector<8x256xbf16>, vector<256x256xbf16>, vector<8x256xf32> -> vector<8x256xf32>
    %c0_9 = arith.constant 0 : index
    %c0_10 = arith.constant 0 : index
    %14 = vector.load %arg4[%c0_9, %c0_10] : memref<1x256xf32, #tpu.memory_space<vmem>>, vector<1x256xf32>
    %15 = vector.broadcast %14 : vector<1x256xf32> to vector<8x256xf32>
    %16 = arith.addf %13, %15 : vector<8x256xf32>
    %cst_11 = arith.constant 0.000000e+00 : f32
    %17 = vector.broadcast %cst_11 : f32 to vector<8x256xf32>
    %18 = arith.maximumf %16, %17 : vector<8x256xf32>
    %19 = arith.truncf %18 : vector<8x256xf32> to vector<8x256xbf16>
    %c0_12 = arith.constant 0 : index
    %c0_13 = arith.constant 0 : index
    %20 = vector.load %arg5[%c0_12, %c0_13] : memref<256x20xf32, #tpu.memory_space<vmem>>, vector<256x20xf32>
    %21 = arith.truncf %20 : vector<256x20xf32> to vector<256x20xbf16>
    %cst_14 = arith.constant dense<0.000000e+00> : vector<8x20xf32>
    %22 = tpu.matmul %19, %21, %cst_14 {dimension_numbers = #tpu.dot_dimension_numbers<[1], [0], [0], [1], [0, 0, 1, 1], [], []>} : vector<8x256xbf16>, vector<256x20xbf16>, vector<8x20xf32> -> vector<8x20xf32>
    %c0_15 = arith.constant 0 : index
    %c0_16 = arith.constant 0 : index
    %23 = vector.load %arg6[%c0_15, %c0_16] : memref<1x20xf32, #tpu.memory_space<vmem>>, vector<1x20xf32>
    %24 = vector.broadcast %23 : vector<1x20xf32> to vector<8x20xf32>
    %25 = arith.addf %22, %24 : vector<8x20xf32>
    %c0_17 = arith.constant 0 : index
    %c0_18 = arith.constant 0 : index
    %26 = vector.load %arg7[%c0_17, %c0_18] : memref<8x20xf32, #tpu.memory_space<vmem>>, vector<8x20xf32>
    tpu.vector_store %arg7[%c0_17, %c0_18], %25 {strides = array<i32>} : memref<8x20xf32, #tpu.memory_space<vmem>>, vector<8x20xf32>,
    %27 = vector.extract_strided_slice %25 {offsets = [4, 0], sizes = [4, 20], strides = [1, 1]} : vector<8x20xf32> to vector<4x20xf32>
    %28 = vector.extract_strided_slice %25 {offsets = [0, 0], sizes = [4, 20], strides = [1, 1]} : vector<8x20xf32> to vector<4x20xf32>
    %29 = arith.subf %27, %28 : vector<4x20xf32>
    %c0_19 = arith.constant 0 : index
    %c0_20 = arith.constant 0 : index
    %30 = vector.load %arg8[%c0_19, %c0_20] : memref<4x20xf32, #tpu.memory_space<vmem>>, vector<4x20xf32>
    tpu.vector_store %arg8[%c0_19, %c0_20], %29 {strides = array<i32>} : memref<4x20xf32, #tpu.memory_space<vmem>>, vector<4x20xf32>,
    return
  }
}

</mosaic_0001>

<bundles_post_ra>
// kernel: enc_priors_forward.1
= control target key start
LH: loop header
LB: loop body
LE: loop exit
PB: predicated region body
PF: predicated region fallthrough
CT: control target
= control target key end

     0   :  { %14 = vsyncpa [#allocation3], 0  ;;  %s378_s30 = smov [#allocation2]   ;;  %s379_s10 = smov 256   ;;  %s557_s0 = inlined_call_operand.vmem [shape: f32[8,16], index: 0, kind: input, shape index: {}]   ;;  %s558_s1 = inlined_call_operand.vmem [shape: f32[16,256], index: 1, kind: input, shape index: {}]   ;;  %s559_s2 = inlined_call_operand.vmem [shape: f32[1,256], index: 2, kind: input, shape index: {}]   ;;  %s560_s3 = inlined_call_operand.hbm [shape: f32[256,256], index: 3, kind: input, shape index: {}]   ;;  %s561_s4 = inlined_call_operand.vmem [shape: f32[1,256], index: 4, kind: input, shape index: {}]   ;;  %s562_s5 = inlined_call_operand.vmem [shape: f32[256,20], index: 5, kind: input, shape index: {}]   ;;  %s563_s6 = inlined_call_operand.vmem [shape: f32[1,20], index: 6, kind: input, shape index: {}]   ;;  %s564_s7 = inlined_call_operand.vmem [shape: f32[8,20], index: 7, kind: output, shape index: {0}]   ;;  %s565_s8 = inlined_call_operand.vmem [shape: f32[4,20], index: 8, kind: output, shape index: {1}]  }
   0x1   :  { %s25_s29 = sshll.u32 %s560_s3, 4  ;;  %s27_s9 = sshll.u32 %s378_s30, 4  ;;  %s26_s29 = int_to_ptr.hbm [resolvable:$true] %s25_s29  ;;  %s28_s9 = int_to_ptr.vmem [resolvable:$true] %s27_s9 }
   0x2   :  { %s380_s11 = smov 16  }
   0x3   :  { %33 = dma.hbm_to_vmem [thread:$0]  %s26_s29, 8192, %s28_s9, [#allocation3], %s379_s10, %s379_s10, %s380_s11  }
   0x4   :  { %376 = dma.done.wait [#allocation3], 8192  }
   0x5   :  { %377 = vsyncadd [#allocation3], 4294959104  ;;  %v47_v0 = vld [vmem:[%s558_s1] sm:$0xff]  ;;  %v49_v1 = vld [vmem:[%s558_s1 + $0x10] sm:$0xff]  ;;  %vm59_vm0 = vcmask 130048   ;;  %vm329_vm1 = vcmask 162816  }
   0x6   :  { %v48_v2 = vld [vmem:[%s558_s1 + $0x8] sm:$0xff]  ;;  %v51_v3 = vpack.c.bf16 %v49_v1, %v47_v0  ;;  %v50_v4 = vld [vmem:[%s558_s1 + $0x18] sm:$0xff]  ;;  %v45_v5 = vld [vmem:[%s557_s0] sm:$0xff]  ;;  %vm335_vm2 = vcmask 162820  }
   0x7   :  { %v121_v6 = vld [vmem:[#allocation2 + $0xe0] sm:$0xff]  ;;  %v52_v7 = vpack.c.bf16 %v50_v4, %v48_v2  ;;  %v46_v8 = vpack.c.bf16 %v45_v5, %v45_v5  ;;  %v123_v9 = vld [vmem:[#allocation2 + $0xf0] sm:$0xff]  ;;  %v122_v14 = vld [vmem:[#allocation2 + $0xe8] sm:$0xff] }
   0x8   :  { %v153_v10 = vld [vmem:[#allocation2 + $0x1e0] sm:$0xff]  ;;  %v155_v11 = vld [vmem:[#allocation2 + $0x1f0] sm:$0xff]  ;;  %70 = vmatpush.bf16.msra.mxu0 %v51_v3  ;;  %v171_v12 = vpack.c.bf16 %v123_v9, %v121_v6  ;;  %v124_v15 = vld [vmem:[#allocation2 + $0xf8] sm:$0xff] }
   0x9   :  { %v187_v13 = vpack.c.bf16 %v155_v11, %v153_v10  ;;  %v154_v16 = vld [vmem:[#allocation2 + $0x1e8] sm:$0xff]  ;;  %83 = vmatpush.bf16.msra.mxu1 %v52_v7  ;;  %v172_v17 = vpack.c.bf16 %v124_v15, %v122_v14  ;;  %v156_v18 = vld [vmem:[#allocation2 + $0x1f8] sm:$0xff]  ;;  %v117_v19 = vld [vmem:[#allocation2 + $0xc0] sm:$0xff] }
   0xa   :  { %v119_v20 = vld [vmem:[#allocation2 + $0xd0] sm:$0xff]  ;;  %195 = vmatpush.bf16.msra.mxu2 %v171_v12  ;;  %v188_v21 = vpack.c.bf16 %v156_v18, %v154_v16  ;;  %v149_v23 = vld [vmem:[#allocation2 + $0x1c0] sm:$0xff]  ;;  %v118_v25 = vld [vmem:[#allocation2 + $0xc8] sm:$0xff] }
   0xb   :  { %208 = vmatpush.bf16.msra.mxu3 %v187_v13  ;;  %v169_v22 = vpack.c.bf16 %v119_v20, %v117_v19  ;;  %v151_v24 = vld [vmem:[#allocation2 + $0x1d0] sm:$0xff]  ;;  %346 = vmatmul.msk.bf16.vlgmr.msra.gmra.mxu0 %vm59_vm0, %v46_v8  ;;  %v120_v27 = vld [vmem:[#allocation2 + $0xd8] sm:$0xff]  ;;  %v150_v28 = vld [vmem:[#allocation2 + $0x1c8] sm:$0xff] }
   0xc   :  { %v185_v26 = vpack.c.bf16 %v151_v24, %v149_v23  ;;  %v152_v29 = vld [vmem:[#allocation2 + $0x1d8] sm:$0xff]  ;;  %347 = vmatmul.msk.bf16.vlgmr.msra.gmra.mxu1 %vm59_vm0, %v46_v8  ;;  %221 = vmatpush.bf16.msrb.mxu0 %v172_v17  ;;  %v170_v30 = vpack.c.bf16 %v120_v27, %v118_v25  ;;  %v113_v31 = vld [vmem:[#allocation2 + $0xa0] sm:$0xff]  ;;  %v115_v32 = vld [vmem:[#allocation2 + $0xb0] sm:$0xff] }
   0xd   :  { %v145_v33 = vld [vmem:[#allocation2 + $0x1a0] sm:$0xff]  ;;  %234 = vmatpush.bf16.msrb.mxu1 %v188_v21  ;;  %v186_v34 = vpack.c.bf16 %v152_v29, %v150_v28  ;;  %v147_v35 = vld [vmem:[#allocation2 + $0x1b0] sm:$0xff]  ;;  %v114_v36 = vld [vmem:[#allocation2 + $0xa8] sm:$0xff]  ;;  %v167_v38 = vpack.c.bf16 %v115_v32, %v113_v31 }
   0xe   :  { %v116_v37 = vld [vmem:[#allocation2 + $0xb8] sm:$0xff]  ;;  %196 = vmatpush.bf16.msra.mxu2 %v169_v22  ;;  %v183_v39 = vpack.c.bf16 %v147_v35, %v145_v33  ;;  %v146_v40 = vld [vmem:[#allocation2 + $0x1a8] sm:$0xff]  ;;  %v109_v42 = vld [vmem:[#allocation2 + $0x80] sm:$0xff] }
   0xf   :  { %209 = vmatpush.bf16.msra.mxu3 %v185_v26  ;;  %v148_v41 = vld [vmem:[#allocation2 + $0x1b8] sm:$0xff]  ;;  %v111_v43 = vld [vmem:[#allocation2 + $0x90] sm:$0xff]  ;;  %v141_v44 = vld [vmem:[#allocation2 + $0x180] sm:$0xff]  ;;  %v168_v46 = vpack.c.bf16 %v116_v37, %v114_v36 }
  0x10   :  { %v143_v45 = vld [vmem:[#allocation2 + $0x190] sm:$0xff]  ;;  %222 = vmatpush.bf16.msrb.mxu0 %v170_v30  ;;  %v184_v47 = vpack.c.bf16 %v148_v41, %v146_v40  ;;  %v110_v48 = vld [vmem:[#allocation2 + $0x88] sm:$0xff]  ;;  %v112_v49 = vld [vmem:[#allocation2 + $0x98] sm:$0xff]  ;;  %v165_v50 = vpack.c.bf16 %v111_v43, %v109_v42 }
  0x11   :  { %235 = vmatpush.bf16.msrb.mxu1 %v186_v34  ;;  %v181_v51 = vpack.c.bf16 %v143_v45, %v141_v44  ;;  %v142_v52 = vld [vmem:[#allocation2 + $0x188] sm:$0xff]  ;;  %v144_v53 = vld [vmem:[#allocation2 + $0x198] sm:$0xff]  ;;  %v105_v54 = vld [vmem:[#allocation2 + $0x60] sm:$0xff]  ;;  %v166_v58 = vpack.c.bf16 %v112_v49, %v110_v48 }
  0x12   :  { %197 = vmatpush.bf16.msra.mxu2 %v167_v38  ;;  %v107_v55 = vld [vmem:[#allocation2 + $0x70] sm:$0xff]  ;;  %v137_v56 = vld [vmem:[#allocation2 + $0x160] sm:$0xff]  ;;  %v182_v59 = vpack.c.bf16 %v144_v53, %v142_v52  ;;  %v106_v60 = vld [vmem:[#allocation2 + $0x68] sm:$0xff] }
  0x13   :  { %210 = vmatpush.bf16.msra.mxu3 %v183_v39  ;;  %v139_v57 = vld [vmem:[#allocation2 + $0x170] sm:$0xff]  ;;  %v108_v61 = vld [vmem:[#allocation2 + $0x78] sm:$0xff]  ;;  %v138_v62 = vld [vmem:[#allocation2 + $0x168] sm:$0xff]  ;;  %v163_v63 = vpack.c.bf16 %v107_v55, %v105_v54 }
  0x14   :  { %223 = vmatpush.bf16.msrb.mxu0 %v168_v46  ;;  %v179_v0 = vpack.c.bf16 %v139_v57, %v137_v56  ;;  %v140_v1 = vld [vmem:[#allocation2 + $0x178] sm:$0xff]  ;;  %v101_v2 = vld [vmem:[#allocation2 + $0x40] sm:$0xff]  ;;  %v103_v3 = vld [vmem:[#allocation2 + $0x50] sm:$0xff]  ;;  %v164_v6 = vpack.c.bf16 %v108_v61, %v106_v60 }
  0x15   :  { %236 = vmatpush.bf16.msrb.mxu1 %v184_v47  ;;  %v133_v4 = vld [vmem:[#allocation2 + $0x140] sm:$0xff]  ;;  %v135_v5 = vld [vmem:[#allocation2 + $0x150] sm:$0xff]  ;;  %v180_v7 = vpack.c.bf16 %v140_v1, %v138_v62  ;;  %v102_v8 = vld [vmem:[#allocation2 + $0x48] sm:$0xff]  ;;  %v161_v10 = vpack.c.bf16 %v103_v3, %v101_v2 }
  0x16   :  { %198 = vmatpush.bf16.msra.mxu2 %v165_v50  ;;  %v104_v9 = vld [vmem:[#allocation2 + $0x58] sm:$0xff]  ;;  %v177_v11 = vpack.c.bf16 %v135_v5, %v133_v4  ;;  %v134_v12 = vld [vmem:[#allocation2 + $0x148] sm:$0xff]  ;;  %v97_v16 = vld [vmem:[#allocation2 + $0x20] sm:$0xff] }
  0x17   :  { %211 = vmatpush.bf16.msra.mxu3 %v181_v51  ;;  %v136_v13 = vld [vmem:[#allocation2 + $0x158] sm:$0xff]  ;;  %v162_v14 = vpack.c.bf16 %v104_v9, %v102_v8  ;;  %v99_v17 = vld [vmem:[#allocation2 + $0x30] sm:$0xff]  ;;  %v129_v18 = vld [vmem:[#allocation2 + $0x120] sm:$0xff] }
  0x18   :  { %224 = vmatpush.bf16.msrb.mxu0 %v166_v58  ;;  %v178_v15 = vpack.c.bf16 %v136_v13, %v134_v12  ;;  %v159_v19 = vpack.c.bf16 %v99_v17, %v97_v16  ;;  %v131_v20 = vld [vmem:[#allocation2 + $0x130] sm:$0xff]  ;;  %v98_v21 = vld [vmem:[#allocation2 + $0x28] sm:$0xff]  ;;  %v100_v22 = vld [vmem:[#allocation2 + $0x38] sm:$0xff] }
  0x19   :  { %237 = vmatpush.bf16.msrb.mxu1 %v182_v59  ;;  %v175_v23 = vpack.c.bf16 %v131_v20, %v129_v18  ;;  %v160_v24 = vpack.c.bf16 %v100_v22, %v98_v21  ;;  %v130_v25 = vld [vmem:[#allocation2 + $0x128] sm:$0xff]  ;;  %v132_v26 = vld [vmem:[#allocation2 + $0x138] sm:$0xff]  ;;  %v93_v28 = vld [vmem:[#allocation2] sm:$0xff] }
  0x1a   :  { %199 = vmatpush.bf16.msra.mxu2 %v163_v63  ;;  %v176_v27 = vpack.c.bf16 %v132_v26, %v130_v25  ;;  %v95_v29 = vld [vmem:[#allocation2 + $0x10] sm:$0xff]  ;;  %v125_v30 = vld [vmem:[#allocation2 + $0x100] sm:$0xff]  ;;  %v94_v33 = vld [vmem:[#allocation2 + $0x8] sm:$0xff] }
  0x1b   :  { %212 = vmatpush.bf16.msra.mxu3 %v179_v0  ;;  %v157_v31 = vpack.c.bf16 %v95_v29, %v93_v28  ;;  %v127_v32 = vld [vmem:[#allocation2 + $0x110] sm:$0xff]  ;;  %v96_v34 = vld [vmem:[#allocation2 + $0x18] sm:$0xff]  ;;  %v126_v37 = vld [vmem:[#allocation2 + $0x108] sm:$0xff] }
  0x1c   :  { %225 = vmatpush.bf16.msrb.mxu0 %v164_v6  ;;  %v173_v35 = vpack.c.bf16 %v127_v32, %v125_v30  ;;  %v158_v36 = vpack.c.bf16 %v96_v34, %v94_v33  ;;  %v128_v38 = vld [vmem:[#allocation2 + $0x118] sm:$0xff]  ;;  %v281_v40 = vld [vmem:[%s562_s5 + $0xf0] sm:$0xff]  ;;  %v279_v42 = vld [vmem:[%s562_s5 + $0xe0] sm:$0xff] }
  0x1d   :  { %238 = vmatpush.bf16.msrb.mxu1 %v180_v7  ;;  %v174_v39 = vpack.c.bf16 %v128_v38, %v126_v37  ;;  %v282_v41 = vld [vmem:[%s562_s5 + $0xf8] sm:$0xff]  ;;  %v280_v44 = vld [vmem:[%s562_s5 + $0xe8] sm:$0xff]  ;;  %v265_v45 = vld [vmem:[%s562_s5 + $0x70] sm:$0xff] }
  0x1e   :  { %200 = vmatpush.bf16.msra.mxu2 %v161_v10  ;;  %v298_v43 = vpack.c.bf16 %v282_v41, %v281_v40  ;;  %v266_v46 = vld [vmem:[%s562_s5 + $0x78] sm:$0xff]  ;;  %v263_v48 = vld [vmem:[%s562_s5 + $0x60] sm:$0xff]  ;;  %v297_v49 = vpack.c.bf16 %v280_v44, %v279_v42  ;;  %v264_v50 = vld [vmem:[%s562_s5 + $0x68] sm:$0xff] }
  0x1f   :  { %213 = vmatpush.bf16.msra.mxu3 %v177_v11  ;;  %v290_v47 = vpack.c.bf16 %v266_v46, %v265_v45  ;;  %v277_v51 = vld [vmem:[%s562_s5 + $0xd0] sm:$0xff]  ;;  %v278_v52 = vld [vmem:[%s562_s5 + $0xd8] sm:$0xff]  ;;  %v289_v53 = vpack.c.bf16 %v264_v50, %v263_v48  ;;  %v275_v57 = vld [vmem:[%s562_s5 + $0xc0] sm:$0xff] }
  0x20   :  { %226 = vmatpush.bf16.msrb.mxu0 %v162_v14  ;;  %v261_v54 = vld [vmem:[%s562_s5 + $0x50] sm:$0xff]  ;;  %v262_v55 = vld [vmem:[%s562_s5 + $0x58] sm:$0xff]  ;;  %v296_v56 = vpack.c.bf16 %v278_v52, %v277_v51  ;;  %v276_v58 = vld [vmem:[%s562_s5 + $0xc8] sm:$0xff] }
  0x21   :  { %239 = vmatpush.bf16.msrb.mxu1 %v178_v15  ;;  %v288_v59 = vpack.c.bf16 %v262_v55, %v261_v54  ;;  %v259_v60 = vld [vmem:[%s562_s5 + $0x40] sm:$0xff]  ;;  %v260_v61 = vld [vmem:[%s562_s5 + $0x48] sm:$0xff]  ;;  %v295_v62 = vpack.c.bf16 %v276_v58, %v275_v57  ;;  %v273_v63 = vld [vmem:[%s562_s5 + $0xb0] sm:$0xff] }
  0x22   :  { %201 = vmatpush.bf16.msra.mxu2 %v159_v19  ;;  %v274_v0 = vld [vmem:[%s562_s5 + $0xb8] sm:$0xff]  ;;  %v287_v1 = vpack.c.bf16 %v260_v61, %v259_v60  ;;  %v271_v3 = vld [vmem:[%s562_s5 + $0xa0] sm:$0xff]  ;;  %v272_v4 = vld [vmem:[%s562_s5 + $0xa8] sm:$0xff] }
  0x23   :  { %214 = vmatpush.bf16.msra.mxu3 %v175_v23  ;;  %v294_v2 = vpack.c.bf16 %v274_v0, %v273_v63  ;;  %v53_v5 = vld [vmem:[%s559_s2] sm:$0x3]  ;;  %v293_v6 = vpack.c.bf16 %v272_v4, %v271_v3  ;;  %v257_v19 = vld [vmem:[%s562_s5 + $0x30] sm:$0xff]  ;;  %v258_v20 = vld [vmem:[%s562_s5 + $0x38] sm:$0xff] }
  0x24   :  { %227 = vmatpush.bf16.msrb.mxu0 %v160_v24  ;;  %v55_v7 = vperm.slane %v53_v5, 0  ;;  %v56_v8 = vperm.slane %v53_v5, 1  ;;  %v286_v21 = vpack.c.bf16 %v258_v20, %v257_v19  ;;  %v269_v22 = vld [vmem:[%s562_s5 + $0x90] sm:$0xff]  ;;  %v270_v23 = vld [vmem:[%s562_s5 + $0x98] sm:$0xff]  ;;  %v255_v25 = vld [vmem:[%s562_s5 + $0x20] sm:$0xff] }
  0x25   :  { %240 = vmatpush.bf16.msrb.mxu1 %v176_v27  ;;  %v292_v24 = vpack.c.bf16 %v270_v23, %v269_v22  ;;  %v256_v26 = vld [vmem:[%s562_s5 + $0x28] sm:$0xff]  ;;  %v267_v28 = vld [vmem:[%s562_s5 + $0x80] sm:$0xff]  ;;  %v254_v32 = vld [vmem:[%s562_s5 + $0x18] sm:$0xff] }
  0x26   :  { %202 = vmatpush.bf16.msra.mxu2 %v157_v31  ;;  %v285_v27 = vpack.c.bf16 %v256_v26, %v255_v25  ;;  %v268_v29 = vld [vmem:[%s562_s5 + $0x88] sm:$0xff]  ;;  %v253_v31 = vld [vmem:[%s562_s5 + $0x10] sm:$0xff]  ;;  %v251_v34 = vld [vmem:[%s562_s5] sm:$0xff] }
  0x27   :  { %215 = vmatpush.bf16.msra.mxu3 %v173_v35  ;;  %v291_v30 = vpack.c.bf16 %v268_v29, %v267_v28  ;;  %v284_v33 = vpack.c.bf16 %v254_v32, %v253_v31  ;;  %v252_v35 = vld [vmem:[%s562_s5 + $0x8] sm:$0xff]  ;;  %v189_v37 = vld [vmem:[%s561_s4] sm:$0x3] }
  0x28   :  { %228 = vmatpush.bf16.msrb.mxu0 %v158_v36  ;;  %v283_v36 = vpack.c.bf16 %v252_v35, %v251_v34  ;;  %v192_v38 = vperm.slane %v189_v37, 1  ;;  %v351_v57 = vld [vmem:[%s563_s6] ss:$0 sm:$0xff] }
  0x29   :  { %241 = vmatpush.bf16.msrb.mxu1 %v174_v39 }
  0x2a   :  { %303 = vmatpush.bf16.msrb.mxu2 %v290_v47 }
  0x2b   :  { %316 = vmatpush.bf16.msrb.mxu3 %v298_v43  ;;  %v191_v43 = vperm.slane %v189_v37, 0 }
  0x2e   :  { %304 = vmatpush.bf16.msrb.mxu2 %v289_v53 }
  0x2f   :  { %317 = vmatpush.bf16.msrb.mxu3 %v297_v49 }
  0x32   :  { %305 = vmatpush.bf16.msrb.mxu2 %v288_v59 }
  0x33   :  { %318 = vmatpush.bf16.msrb.mxu3 %v296_v56 }
  0x36   :  { %306 = vmatpush.bf16.msrb.mxu2 %v287_v1 }
  0x37   :  { %319 = vmatpush.bf16.msrb.mxu3 %v295_v62 }
  0x3a   :  { %307 = vmatpush.bf16.msrb.mxu2 %v286_v21 }
  0x3b   :  { %320 = vmatpush.bf16.msrb.mxu3 %v294_v2 }
  0x3e   :  { %308 = vmatpush.bf16.msrb.mxu2 %v285_v27 }
  0x3f   :  { %321 = vmatpush.bf16.msrb.mxu3 %v293_v6 }
  0x42   :  { %309 = vmatpush.bf16.msrb.mxu2 %v284_v33 }
  0x43   :  { %322 = vmatpush.bf16.msrb.mxu3 %v292_v24 }
  0x46   :  { %310 = vmatpush.bf16.msrb.mxu2 %v283_v36 }
  0x47   :  { %323 = vmatpush.bf16.msrb.mxu3 %v291_v30 }
  0x88   :  { %v72_v9 = vpop.f32.mrf.mxu0 }
  0x89   :  { %v73_v10 = vadd.f32 %v72_v9, %v55_v7  ;;  %v85_v11 = vpop.f32.mrf.mxu1 }
  0x8a   :  { %v86_v12 = vadd.f32 %v85_v11, %v56_v8 }
  0x8b   :  { %v89_v13 = vmax.f32 %v73_v10, 0.0 }
  0x8c   :  { %v90_v14 = vmax.f32 %v86_v12, 0.0 }
  0x8d   :  { %v91_v15 = vpack.c.bf16 %v89_v13, %v89_v13 }
  0x8e   :  { %v92_v16 = vpack.c.bf16 %v90_v14, %v90_v14 }
  0x8f   :  { %203 = vmatmul.bf16.vlgmr.msra.gmra.mxu2 %v91_v15  ;;  %229 = vmatmul.bf16.vlgmr.msrb.gmra.mxu0 %v91_v15 }
  0x90   :  { %216 = vmatmul.bf16.vlgmr.msra.gmra.mxu3 %v92_v16  ;;  %242 = vmatmul.bf16.vlgmr.msrb.gmra.mxu1 %v92_v16  ;;  %v74_v17 = vpop.f32.mrf.mxu0 }
  0x91   :  { %v87_v18 = vpop.f32.mrf.mxu1 }
 0x10c   :  { %v230_v39 = vpop.f32.mrf.mxu0 }
 0x10d   :  { %v231_v40 = vadd.f32 %v230_v39, %v192_v38  ;;  %v243_v41 = vpop.f32.mrf.mxu1 }
 0x10f   :  { %v244_v42 = vadd.f32 %v243_v41, %v231_v40 }
 0x111   :  { %v248_v44 = vmax.f32 %v244_v42, 0.0 }
 0x112   :  { %v204_v45 = vpop.f32.mrf.mxu2 }
 0x113   :  { %v250_v46 = vpack.c.bf16 %v248_v44, %v248_v44  ;;  %v205_v47 = vadd.f32 %v204_v45, %v191_v43  ;;  %v217_v48 = vpop.f32.mrf.mxu3 }
 0x114   :  { %v232_v49 = vpop.f32.mrf.mxu0 }
 0x115   :  { %v218_v50 = vadd.f32 %v217_v48, %v205_v47  ;;  %v245_v51 = vpop.f32.mrf.mxu1  ;;  %324 = vmatmul.bf16.vlgmr.msrb.gmra.mxu3 %v250_v46 }
 0x117   :  { %v247_v52 = vmax.f32 %v218_v50, 0.0 }
 0x119   :  { %v249_v53 = vpack.c.bf16 %v247_v52, %v247_v52 }
 0x11a   :  { %v206_v54 = vpop.f32.mrf.mxu2 }
 0x11b   :  { %v219_v55 = vpop.f32.mrf.mxu3  ;;  %311 = vmatmul.bf16.vlgmr.msrb.gmra.mxu2 %v249_v53 }
 0x198   :  { %v325_v56 = vpop.f32.mrf.mxu3 }
 0x19e   :  { %v312_v58 = vpop.f32.mrf.mxu2 }
 0x19f   :  { %v313_v59 = vadd.f32 %v351_v57, %v312_v58 }
 0x1a0   :  { %v327_v60 = vpop.f32.mrf.mxu3 }
 0x1a1   :  { %v326_v61 = vadd.f32 %v325_v56, %v313_v59 }
 0x1a3   :  { %330 = vst.msk [vmem:[%s564_s7] sm:$0xff] %vm329_vm1, %v326_v61  ;;  %v332_v62 = vrot.slane %v326_v61, 4 }
 0x1a5   :  { %v334_v63 = vsub.f32 %v326_v61, %v332_v62 }
 0x1a6   :  { %v314_v0 = vpop.f32.mrf.mxu2 }
 0x1a7   :  { %336 = vst.msk [vmem:[%s565_s8 - $0x4] sm:$0xf0] %vm335_vm2, %v334_v63 }
 0x1a8   :  { %345 = vsyncpa [#allocation3], 1 }

</bundles_post_ra>
